<compile_context>
chip_gen: v6e
topology: v6e:2x2x1
jax: 0.10.0
libtpu: 0.0.40
codegen_flags: <defaults>
</compile_context>

<pallas_src>
import math
import functools

import jax
import jax.numpy as jnp
from jax import lax
from jax.experimental import pallas as pl
from jax.experimental.pallas import tpu as pltpu


def causal_attention_kernel(x_ref, wqkv_ref, o_ref, *, d_pad):
    bb, T, d_in = x_ref.shape
    in_dtype = x_ref.dtype

    # Fused QKV projection: (bb*T, d_in) @ (d_in, 3*d_pad), f32 MXU accumulation.
    # T % 8 == 0 (asserted in the wrapper) => this reshape is a free sublane merge.
    x2d = x_ref[...].reshape(bb * T, d_in)
    qkv = jnp.dot(x2d, wqkv_ref[...], preferred_element_type=jnp.float32)
    qkv = qkv.reshape(bb, T, 3 * d_pad).astype(in_dtype)

    # d_pad is a multiple of 128 -> these slices are lane-tile aligned (free).
    q = qkv[..., :d_pad]            # 1/sqrt(d_out) scale folded into Wq on host
    k = qkv[..., d_pad:2 * d_pad]
    v = qkv[..., 2 * d_pad:]

    # Attention scores (bb, T_query, T_key), f32 accumulation on the MXU.
    scores = jnp.einsum("bqd,bkd->bqk", q, k, preferred_element_type=jnp.float32)

    # Causal mask: torch.triu(ones, diagonal=1) -> mask where key > query.
    # Finite bias (not -inf): exp underflows to exact 0 and a fully-masked
    # column (e.g. a future padding mask) can never produce NaN.
    row = lax.broadcasted_iota(jnp.int32, (T, T), 0)   # query index
    col = lax.broadcasted_iota(jnp.int32, (T, T), 1)   # key index
    scores = jnp.where((col > row)[None, :, :], jnp.float32(-1e30), scores)

    # Softmax over the *query* axis (dim=1), exactly as the PyTorch reference.
    m = jnp.max(scores, axis=1, keepdims=True)              # (bb, 1, T)
    e = jnp.exp(scores - m)
    denom = jnp.sum(e, axis=1, keepdims=True)                # (bb, 1, T)
    # TODO(synk): use pl.reciprocal(..., approx=True) (EUP vrcp) in bf16
    # production builds; kept exact here to hold the demo's 1e-5 tolerance.
    weights = e * pl.reciprocal(denom, approx=False)

    # Dropout: eval-mode nn.Dropout is identity.
    # TODO(synk): training-mode stochastic dropout (pltpu.prng_*) not implemented.

    ctx = jnp.einsum("bqk,bkd->bqd", weights.astype(in_dtype), v,
                     preferred_element_type=jnp.float32)
    # Lane-dense store: last dim is d_pad (multiple of 128) -> unmasked vst.
    o_ref[...] = ctx.astype(o_ref.dtype)


def _choose_block_b(B, T, d_in, d_pad):
    """How many batch elements to pack into one grid step."""
    # Target ~256 MXU rows per fused projection (v6e/v7x MXUs are 256 wide;
    # two 128-row passes are also fine on v5e's 128-wide MXU).
    bb = min(B, max(1, 256 // max(T, 1)))
    # Keep >= 2 grid steps when B allows so v7x's second TensorCore gets work.
    if B >= 2:
        bb = min(bb, max(1, B // 2))
    # VMEM cap, sized against v7x (64 MiB physical / 32 MiB scoped), not 128 MiB:
    # per-batch f32 live set ~ scores+e+weights (3*T*T) + qkv/ctx (4*T*d_pad) + x.
    per_b_bytes = 4 * (3 * T * T + 4 * T * d_pad + T * d_in)
    budget = 24 * 1024 * 1024
    bb = min(bb, max(1, budget // max(per_b_bytes, 1)))
    while B % bb:
        bb -= 1
    return bb


def causal_attention(x, w_query, w_key, w_value, *, block_b=None):
    """x: (B, T, d_in) or (T, d_in); w_*: (d_out, d_in) (PyTorch Linear layout).

    Returns (B, T, d_out)."""
    if x.ndim == 2:                       # mirror the module's unsqueeze(0)
        x = x[None]
    B, T, d_in = x.shape
    d_out = w_query.shape[0]

    # TODO(synk): pad T (with an extra query-row mask term) instead of asserting.
    assert T % 8 == 0, "T must be a multiple of 8 (sublane) for free reshapes"

    # Pad each Q/K/V slab out to a 128-lane multiple: tile-aligned in-kernel
    # slices and a lane-dense output store.  Padded weight columns are zero,
    # so the extra lanes carry exact zeros and never affect real-lane results.
    d_pad = ((max(d_out, 128) + 127) // 128) * 128

    scale = jnp.asarray(1.0 / math.sqrt(d_out), w_query.dtype)

    def prep(w):  # (d_out, d_in) -> (d_in, d_pad), zero-padded lanes
        return jnp.pad(w.T.astype(x.dtype), ((0, 0), (0, d_pad - d_out)))

    # Fold the 1/sqrt(d_out) softmax scale into the Q weight; fuse Q/K/V.
    w_qkv = jnp.concatenate(
        [prep(w_query * scale), prep(w_key), prep(w_value)], axis=1)

    if block_b is None:
        block_b = _choose_block_b(B, T, d_in, d_pad)

    kernel = functools.partial(causal_attention_kernel, d_pad=d_pad)

    # TODO(synk): for production T (T*T f32 scores per batch element vs the
    # 64 MiB v7x VMEM) restructure with a KEY-axis grid dimension: key columns
    # are independent under the dim=1 (query-axis) softmax, and weights@V
    # becomes a key-reduction into an f32 VMEM accumulator (pl.when init/final).
    # TODO(synk): the weight BlockSpec is grid-invariant; single-buffer it
    # (pipeline_mode=pl.Buffered(1)) or add a d_in-reduction grid axis once
    # d_in * 3 * d_pad stops being negligible.
    out = pl.pallas_call(
        kernel,
        out_shape=jax.ShapeDtypeStruct((B, T, d_pad), x.dtype),
        grid=(B // block_b,),
        in_specs=[
            pl.BlockSpec((block_b, T, d_in), lambda b: (b, 0, 0)),
            pl.BlockSpec((d_in, 3 * d_pad), lambda b: (0, 0)),
        ],
        out_specs=pl.BlockSpec((block_b, T, d_pad), lambda b: (b, 0, 0)),
        compiler_params=pltpu.CompilerParams(
            dimension_semantics=("parallel",),
            vmem_limit_bytes=32 * 1024 * 1024,
        ),
    )(x, w_qkv)

    return out[..., :d_out]        # strip the lane padding (cheap XLA slice)


def causal_attention_ref(x, w_query, w_key, w_value):
    """Pure-JAX reference mirroring the PyTorch forward exactly."""
    d_out = w_query.shape[0]
    q = jnp.einsum("btd,od->bto", x, w_query)
    k = jnp.einsum("btd,od->bto", x, w_key)
    v = jnp.einsum("btd,od->bto", x, w_value)
    scores = jnp.einsum("bqo,bko->bqk", q, k)
    T = x.shape[1]
    mask = jnp.triu(jnp.ones((T, T), dtype=bool), k=1)
    scores = jnp.where(mask[None], -jnp.inf, scores)
    weights = jax.nn.softmax(scores / math.sqrt(d_out), axis=1)  # dim=1, as in ref
    return jnp.einsum("bqk,bko->bqo", weights, v)


if __name__ == "__main__":
    B, T, d_in, d_out = 2, 8, 32, 16

    key = jax.random.PRNGKey(0)
    kx, kq, kk, kv = jax.random.split(key, 4)

    x = jax.random.normal(kx, (B, T, d_in), dtype=jnp.float32)
    # Deterministic Linear-weight init (uniform in +/- 1/sqrt(d_in), PyTorch-like bound)
    bound = 1.0 / math.sqrt(d_in)
    w_query = jax.random.uniform(kq, (d_out, d_in), jnp.float32, -bound, bound)
    w_key = jax.random.uniform(kk, (d_out, d_in), jnp.float32, -bound, bound)
    w_value = jax.random.uniform(kv, (d_out, d_in), jnp.float32, -bound, bound)

    out = causal_attention(x, w_query, w_key, w_value)
    out = jax.block_until_ready(out)

    ref = causal_attention_ref(x, w_query, w_key, w_value)
    assert out.shape == (B, T, d_out)
    assert jnp.allclose(out, ref, atol=1e-5, rtol=1e-5), "mismatch vs reference"

    print("KERNEL_OK")
</pallas_src>

<mosaic_0001>
module attributes {stable_mosaic.version = 11 : i64} {
  func.func @causal_attention_kernel(%arg0: i32, %arg1: memref<1x8x32xf32, #tpu.memory_space<vmem>>, %arg2: memref<32x384xf32, #tpu.memory_space<vmem>>, %arg3: memref<1x8x128xf32, #tpu.memory_space<vmem>>) attributes {dimension_semantics = [#tpu.dimension_semantics<parallel>], iteration_bounds = array<i64: 2>, scalar_prefetch = 0 : i64, scratch_operands = 0 : i64, tpu.core_type = #tpu.core_type<tc>, window_params = [{transform_indices = @transform_0, window_bounds = array<i64: 1, 8, 32>}, {pipeline_mode = #tpu.pipeline_mode<synchronous>, transform_indices = @transform_1, window_bounds = array<i64: 32, 384>}, {transform_indices = @transform_2, window_bounds = array<i64: 1, 8, 128>}]} {
    %c0 = arith.constant 0 : index
    %c0_0 = arith.constant 0 : index
    %c0_1 = arith.constant 0 : index
    %0 = vector.load %arg1[%c0, %c0_0, %c0_1] : memref<1x8x32xf32, #tpu.memory_space<vmem>>, vector<1x8x32xf32>
    %1 = vector.shape_cast %0 : vector<1x8x32xf32> to vector<8x32xf32>
    %c0_2 = arith.constant 0 : index
    %c0_3 = arith.constant 0 : index
    %2 = vector.load %arg2[%c0_2, %c0_3] : memref<32x384xf32, #tpu.memory_space<vmem>>, vector<32x384xf32>
    %cst = arith.constant dense<0.000000e+00> : vector<8x384xf32>
    %3 = tpu.matmul %1, %2, %cst {dimension_numbers = #tpu.dot_dimension_numbers<[1], [0], [0], [1], [0, 0, 1, 1], [], []>} : vector<8x32xf32>, vector<32x384xf32>, vector<8x384xf32> -> vector<8x384xf32>
    %4 = vector.shape_cast %3 : vector<8x384xf32> to vector<1x8x384xf32>
    %5 = vector.extract_strided_slice %4 {offsets = [0, 0, 0], sizes = [1, 8, 128], strides = [1, 1, 1]} : vector<1x8x384xf32> to vector<1x8x128xf32>
    %6 = vector.extract_strided_slice %4 {offsets = [0, 0, 128], sizes = [1, 8, 128], strides = [1, 1, 1]} : vector<1x8x384xf32> to vector<1x8x128xf32>
    %7 = vector.extract_strided_slice %4 {offsets = [0, 0, 256], sizes = [1, 8, 128], strides = [1, 1, 1]} : vector<1x8x384xf32> to vector<1x8x128xf32>
    "tpu.trace_start"() <{level = 10 : i32, message = "bqd,bkd->bqk"}> : () -> ()
    %cst_4 = arith.constant dense<0.000000e+00> : vector<1x8x8xf32>
    %8 = tpu.matmul %5, %6, %cst_4 {dimension_numbers = #tpu.dot_dimension_numbers<[2], [2], [1], [1], [0, 0, 0, 1, 1, 1], [0], [0]>} : vector<1x8x128xf32>, vector<1x8x128xf32>, vector<1x8x8xf32> -> vector<1x8x8xf32>
    "tpu.trace_stop"() : () -> ()
    %9 = tpu.iota {dimensions = array<i32: 0>} : vector<8x8xi32>
    %10 = tpu.iota {dimensions = array<i32: 1>} : vector<8x8xi32>
    %11 = arith.cmpi sgt, %10, %9 : vector<8x8xi32>
    %12 = vector.shape_cast %11 : vector<8x8xi1> to vector<1x8x8xi1>
    %cst_5 = arith.constant -1.000000e+30 : f32
    %13 = vector.broadcast %cst_5 : f32 to vector<1x8x8xf32>
    %14 = arith.select %12, %13, %8 : vector<1x8x8xi1>, vector<1x8x8xf32>
    %cst_6 = arith.constant dense<0xFF800000> : vector<1x8xf32>
    %15 = vector.multi_reduction <maximumf>, %14, %cst_6 [1] : vector<1x8x8xf32> to vector<1x8xf32>
    %16 = vector.shape_cast %15 : vector<1x8xf32> to vector<1x1x8xf32>
    %17 = vector.broadcast %16 : vector<1x1x8xf32> to vector<1x8x8xf32>
    %18 = arith.subf %14, %17 : vector<1x8x8xf32>
    %19 = math.exp %18 : vector<1x8x8xf32>
    %cst_7 = arith.constant dense<0.000000e+00> : vector<1x8xf32>
    %20 = vector.multi_reduction <add>, %19, %cst_7 [1] : vector<1x8x8xf32> to vector<1x8xf32>
    %21 = vector.shape_cast %20 : vector<1x8xf32> to vector<1x1x8xf32>
    %22 = tpu.reciprocal %21 : vector<1x1x8xf32> -> vector<1x1x8xf32>
    %23 = vector.broadcast %22 : vector<1x1x8xf32> to vector<1x8x8xf32>
    %24 = arith.mulf %19, %23 : vector<1x8x8xf32>
    "tpu.trace_start"() <{level = 10 : i32, message = "bqk,bkd->bqd"}> : () -> ()
    %cst_8 = arith.constant dense<0.000000e+00> : vector<1x8x128xf32>
    %25 = tpu.matmul %24, %7, %cst_8 {dimension_numbers = #tpu.dot_dimension_numbers<[2], [1], [1], [2], [0, 0, 0, 1, 1, 2], [0], [0]>} : vector<1x8x8xf32>, vector<1x8x128xf32>, vector<1x8x128xf32> -> vector<1x8x128xf32>
    "tpu.trace_stop"() : () -> ()
    %c0_9 = arith.constant 0 : index
    %c0_10 = arith.constant 0 : index
    %c0_11 = arith.constant 0 : index
    %26 = vector.load %arg3[%c0_9, %c0_10, %c0_11] : memref<1x8x128xf32, #tpu.memory_space<vmem>>, vector<1x8x128xf32>
    tpu.vector_store %arg3[%c0_9, %c0_10, %c0_11], %25 {strides = array<i32>} : memref<1x8x128xf32, #tpu.memory_space<vmem>>, vector<1x8x128xf32>,
    return
  }
  func.func @transform_0(%arg0: i32) -> (i32, i32, i32) {
    %c0_i32 = arith.constant 0 : i32
    %c0_i32_0 = arith.constant 0 : i32
    %c0_i32_1 = arith.constant 0 : i32
    return %arg0, %c0_i32, %c0_i32_0 : i32, i32, i32
  }
  func.func @transform_1(%arg0: i32) -> (i32, i32) {
    %c0_i32 = arith.constant 0 : i32
    %c0_i32_0 = arith.constant 0 : i32
    %c0_i32_1 = arith.constant 0 : i32
    return %c0_i32, %c0_i32_0 : i32, i32
  }
  func.func @transform_2(%arg0: i32) -> (i32, i32, i32) {
    %c0_i32 = arith.constant 0 : i32
    %c0_i32_0 = arith.constant 0 : i32
    %c0_i32_1 = arith.constant 0 : i32
    return %arg0, %c0_i32, %c0_i32_0 : i32, i32, i32
  }
}

</mosaic_0001>

<bundles_post_ra>
// kernel: tpu_custom_call.1
= control target key start
LH: loop header
LB: loop body
LE: loop exit
PB: predicated region body
PF: predicated region fallthrough
CT: control target
= control target key end

     0   :  { %7 = vsyncpa [#allocation3], 0  ;;  %s1032_s0 = inlined_call_operand.hbm [shape: f32[2,8,32], index: 0, kind: input, shape index: {}]   ;;  %s1033_s1 = inlined_call_operand.hbm [shape: f32[32,384], index: 1, kind: input, shape index: {}]   ;;  %s1034_s2 = inlined_call_operand.hbm [shape: f32[2,8,128], index: 2, kind: output, shape index: {}]  }
   0x1   :  { %9 = vsyncpa [#allocation3 + $0x1], 0 }
   0x2   :  { %10 = vsyncpa [#allocation6], 0 }
   0x3   :  { %11 = vsyncpa [#allocation4], 0 }
   0x4   :  { %13 = vsyncpa [#allocation4 + $0x1], 0  ;;  %s854_s9 = smov 0   ;;  %s856_s10 = smov 0  }
   0x5   :  { %s858_s11 = smov 0   ;;  %s860_s12 = smov 0  }
   0x6 LB: > { %s875_s13 = sadd.s32 4294967295, %s830_s12   ;;  %s596_s14 = sadd.s32 4294967294, %s830_s12   ;;  %s830_s12 = sphi %s860_s12, %s1056_s12   ;;  %s826_s11 = sphi %s858_s11, %s1055_s11   ;;  %s822_s10 = sphi %s856_s10, %s1054_s10   ;;  %s818_s9 = sphi %s854_s9, %s1053_s9  }
   0x7   : > { %p39_p0 = scmp.ne.s32.totalorder %s822_s10, %s818_s9  ;;  %p1035_p1 = scmp.eq.s32.totalorder %s875_s13, 0 }
   0x8   : > { %p90_p3 = scmp.eq.s32.totalorder %s596_s14, 1  ;;  %p597_p5 = scmp.ge.s32.totalorder %s830_s12, 1 }
   0x9   : > { %p884_p4 = por %p1035_p1, %p39_p0  ;;  %p97_p7 = scmp.lt.s32.totalorder %s830_s12, 3 }
   0xa   : > { %p889_p6 = por %p90_p3, %p39_p0  ;;  %s832_s18 = smov [#allocation5]  }
   0xb   : > { %s1039_s15 = scalar_select %p884_p4, 1, 0 }
   0xc   : > { %s1040_s16 = scalar_select %p889_p6, 1, 0 }
   0xd   : > { %p894_p8 = pnand %p597_p5, %p97_p7  ;;  %s109_s19 = sshll.u32 %s832_s18, 4  ;;  %s110_s19 = int_to_ptr.vmem [resolvable:$true] %s109_s19 }
   0xe   : > { %s908_s21 = sadd.s32 1, %s830_s12   ;;  %s26_s22 = sadd.s32 1, %s826_s11 }
   0xf   : > { %s1041_s17 = scalar_select %p894_p8, 1, 0 }
  0x10   : > { %p651_p9 = pneg %p894_p8  ;;  %s23_s23 = ssub.s32 %s830_s12, %s908_s21 }
  0x11   : > { %s719_s24 = scalar_lea.vmem %s110_s19, 1536  ;;  %p727_p5 = scmp.lt.s32.totalorder %s110_s19, %s110_s19 }
  0x12   : > { %p903_p11 = pnand %p651_p9, %p1035_p1  ;;  %p720_p13 = scmp.ne.s32.totalorder %s110_s19, %s719_s24 }
  0x13   : > { %p728_p7 = scmp.lt.s32.totalorder %s719_s24, %s719_s24 }
  0x14   : > { %p710_p12 = pneg %p903_p11 }
  0x15   : > { %p729_p10 = por %p728_p7, %p727_p5 }
  0x16   : > { %p722_p0 = pnand %p720_p13, %p710_p12 }
  0x18   : > { %p723_p3 = pneg %p722_p0 }
  0x1a   : > { %p730_p2 = pnand %p729_p10, %p723_p3 }
  0x1c   : > { %733 = shalt.err (!%p730_p2)
}
  0x1d   : > { %s833_s25 = smov 384   ;;  %s834_s26 = smov 24  }
  0x1e   : > { %654 = dma.hbm_to_vmem [thread:$0]  (!%p903_p11), %s1033_s1, 1536, %s110_s19, [#allocation6], %s833_s25, %s833_s25, %s834_s26  }
  0x1f   : > { %p24_p9 = scmp.eq.s32.totalorder %s23_s23, 0  ;;  %p33_p12 = scmp.ne.s32.totalorder %s826_s11, %s822_s10 }
  0x20   : > { %p34_p10 = scmp.eq.s32.totalorder %s830_s12, 0  ;;  %p664_p2 = scmp.lt.s32.totalorder %s830_s12, 2 }
  0x21   : > { %s925_s29 = scalar_select %p24_p9, %s826_s11, %s26_s22  }
  0x22   : > { %p35_p13 = por %p34_p10, %p33_p12  ;;  %p1043_p0 = scmp.eq.s32.totalorder %s875_s13, 1 }
  0x23   : > { %s123_s3 = sand.u32 1, %s826_s11   ;;  %s601_s4 = sshll.u32 %s830_s12, 7 }
  0x24   : > { %p929_p3 = por %p1043_p0, %p33_p12  ;;  %s600_s5 = sshll.u32 %s123_s3, 3 }
  0x25   : > { %s938_s8 = scalar_lea.hbm %s1032_s0, %s601_s4  ;;  %s127_s14 = scalar_lea.vmem [#allocation2], %s600_s5 }
  0x26   : > { %s1044_s30 = scalar_select %p929_p3, 1, 0 }
  0x27   : > { %s134_s18 = sshll.u32 %s127_s14, 4  ;;  %p940_p11 = pnand %p664_p2, %p35_p13  ;;  %s135_s18 = int_to_ptr.vmem [resolvable:$true] %s134_s18 }
  0x28   : > { %s124_s20 = scalar_lea.sflag [#allocation3], %s123_s3  ;;  %s734_s22 = scalar_lea.hbm %s938_s8, 128 }
  0x29   : > { %p735_p5 = scmp.ne.s32.totalorder %s938_s8, %s734_s22  ;;  %p736_p7 = pneg %p940_p11 }
  0x2a   : > { %s739_s25 = scalar_lea.hbm %s1032_s0, 256  ;;  %p740_p10 = scmp.lt.s32.totalorder %s938_s8, %s1032_s0 }
  0x2b   : > { %p737_p9 = pnand %p736_p7, %p735_p5  ;;  %p741_p2 = scmp.lt.s32.totalorder %s739_s25, %s734_s22 }
  0x2d   : > { %p738_p12 = pneg %p737_p9  ;;  %p742_p13 = por %p741_p2, %p740_p10 }
  0x2f   : > { %p743_p0 = pnand %p742_p13, %p738_p12 }
  0x31   : > { %746 = shalt.err (!%p743_p0)
}
  0x32   : > { %s747_s28 = scalar_lea.vmem %s135_s18, 128  ;;  %s835_s3 = smov [#allocation2]  }
  0x33   : > { %p748_p1 = scmp.ne.s32.totalorder %s135_s18, %s747_s28  ;;  %s752_s4 = sshll.u32 %s835_s3, 4  ;;  %s753_s4 = int_to_ptr.vmem [resolvable:$false] %s752_s4 }
  0x34   : > { %s754_s5 = scalar_lea.vmem %s753_s4, 256  ;;  %p755_p5 = scmp.lt.s32.totalorder %s135_s18, %s753_s4 }
  0x35   : > { %p750_p6 = pnand %p748_p1, %p736_p7  ;;  %p756_p9 = scmp.lt.s32.totalorder %s754_s5, %s747_s28 }
  0x37   : > { %p751_p3 = pneg %p750_p6  ;;  %p757_p4 = por %p756_p9, %p755_p5 }
  0x39   : > { %p758_p8 = pnand %p757_p4, %p751_p3 }
  0x3b   : > { %761 = shalt.err (!%p758_p8)
}
  0x3c   : > { %658 = dma.hbm_to_vmem [thread:$0]  (!%p940_p11), %s938_s8, 128, %s135_s18, %s124_s20  }
  0x3d   : > { %p1046_p12 = scmp.ne.s32.totalorder %s1041_s17, 0 }
  0x3e   : > { %s961_s6 = sand.u32 (!%p1046_p12), 1, %s822_s10   ;;  %p1047_p1 = scmp.ne.s32.totalorder (!%p1046_p12), %s1039_s15, 0 }
  0x3f   : > { %143 = sbr.rel (%p1046_p12) target bundleno = 741 (0x2e5), region = 28  ;;  %s603_s7 = sshll.u32 (!%p1046_p12), %s961_s6, 3 }
  0x40   : > { %s146_s14 = scalar_lea.sflag (!%p1046_p12), [#allocation3], %s961_s6  ;;  %s149_s22 = scalar_lea.vmem (!%p1046_p12), [#allocation2], %s603_s7 }
  0x44   : > { %805 = dma.done.wait (%p1047_p1), %s146_s14, 128  }
  0x45   : > { %807 = vsyncadd (%p1047_p1), %s146_s14, 4294967168  ;;  %p1048_p4 = scmp.eq.s32.totalorder %s875_s13, 0 }
  0x47   : > { %809 = dma.done.wait (%p1048_p4), [#allocation6], 1536   ;;  %p1049_p6 = pmov %p1048_p4 }
  0x48   : > { %v836_v0 = vmov 0.0   ;;  %v185_v1 = vld [vmem:[#allocation5 + $0x50] sm:$0xff]  ;;  %v184_v2 = vld [vmem:[#allocation5 + $0x48] sm:$0xff]  ;;  %v182_v3 = vld [vmem:[#allocation5 + $0x38] sm:$0xff]  ;;  %vm187_vm0 = vcmask 261120   ;;  %vm837_vm1 = vmmov 0   ;;  %v402_v18 = vlaneseq }
  0x49   : > { %811 = vsyncadd (%p1049_p6), [#allocation6], 4294965760  ;;  %255 = vmatprep.mubr.f32.mxu0 %v836_v0  ;;  %622 = vmatprep.subr.mxu1 %v836_v0  ;;  %v181_v4 = vld [vmem:[#allocation5 + $0x30] sm:$0xff]  ;;  %v179_v5 = vld [vmem:[#allocation5 + $0x20] sm:$0xff]  ;;  %vm408_vm3 = vcmask 64512   ;;  %s173_s15 = scalar_lea.vmem [#allocation7], %s603_s7 }
  0x4a   : > { %215 = vmatprep.subr.mxu0 %v185_v1  ;;  %v178_v6 = vld [vmem:[#allocation5 + $0x18] sm:$0xff]  ;;  %v176_v7 = vld [vmem:[#allocation5 + $0x8] sm:$0xff]  ;;  %v175_v8 = vld [vmem:[#allocation5] sm:$0xff]  ;;  %630 = vmatprep.mubr.msk.f32.mxu1 %vm837_vm1, %v836_v0  ;;  %v403_v19 = vshrl.u32 %v402_v18, 7  ;;  %v405_v20 = vand.u32 127, %v402_v18  ;;  %s516_s17 = sshll.u32 %s173_s15, 4  ;;  %s986_s17 = int_to_ptr.vmem [resolvable:$true] %s516_s17 }
  0x4b   : > { %216 = vmatpush1.msra.mxu0 %v184_v2  ;;  %v174_v9 = vld [vmem:[%s149_s22] sm:$0xff]  ;;  %v183_v11 = vld [vmem:[#allocation5 + $0x40] sm:$0xff]  ;;  %v180_v12 = vld [vmem:[#allocation5 + $0x28] sm:$0xff]  ;;  %s610_s8 = sshll.u32 %s875_s13, 7  ;;  %s503_s23 = scalar_lea.sflag [#allocation4], %s961_s6 }
  0x4c   : > { %217 = vmatprep.subr.mxu0 %v182_v3  ;;  %v186_v10 = vld [vmem:[#allocation5 + $0x58] sm:$0xff]  ;;  %v177_v13 = vld [vmem:[#allocation5 + $0x10] sm:$0xff]  ;;  %vm406_vm2 = vcmp.gt.s32.totalorder %v405_v20, %v403_v19  ;;  %s991_s20 = scalar_lea.hbm %s1034_s2, %s610_s8  ;;  %s762_s24 = scalar_lea.vmem %s986_s17, 128 }
  0x4d   : > { %218 = vmatpush1.msra.mxu0 %v181_v4  ;;  %623 = vmatpush3.msra.mxu1 %v186_v10  ;;  %p763_p8 = scmp.ne.s32.totalorder %s986_s17, %s762_s24  ;;  %p1050_p3 = scmp.ne.s32.totalorder %s1044_s30, 0 }
  0x4e   : > { %219 = vmatprep.subr.mxu0 %v179_v5  ;;  %624 = vmatprep.subr.mxu1 %v836_v0  ;;  %s838_s13 = smov [#allocation7]  }
  0x4f   : > { %220 = vmatpush1.msra.mxu0 %v178_v6  ;;  %625 = vmatpush3.msra.mxu1 %v183_v11  ;;  %p764_p11 = pnand %p763_p8, %p1050_p3  ;;  %s766_s25 = sshll.u32 %s838_s13, 4  ;;  %s767_s25 = int_to_ptr.vmem [resolvable:$false] %s766_s25 }
  0x50   : > { %221 = vmatprep.subr.mxu0 %v176_v7  ;;  %626 = vmatprep.subr.mxu1 %v836_v0  ;;  %s768_s26 = scalar_lea.vmem %s767_s25, 256  ;;  %p769_p10 = scmp.lt.s32.totalorder %s986_s17, %s767_s25 }
  0x51   : > { %222 = vmatpush1.msra.mxu0 %v175_v8  ;;  %627 = vmatpush3.msra.mxu1 %v180_v12  ;;  %p765_p7 = pneg %p764_p11  ;;  %p770_p2 = scmp.lt.s32.totalorder %s768_s26, %s762_s24 }
  0x52   : > { %606 = vmatmul.mubr.msk.f32.vlgmr.msra.gmra.mxu0 %vm187_vm0, %v174_v9  ;;  %633 = vmatprep.subr.mxu0 %v836_v0 }
  0x53   : > { %635 = vmatprep.mubr.msk.f32.mxu0 %vm837_vm1, %v836_v0  ;;  %628 = vmatprep.subr.mxu1 %v836_v0  ;;  %p771_p13 = por %p770_p2, %p769_p10 }
  0x54   : > { %629 = vmatpush3.msra.mxu1 %v177_v13 }
  0x55   : > { %631 = vmatmul.mubr.msk.f32.vlgmr.msra.gmra.mxu1 %vm187_vm0, %v174_v9  ;;  %638 = vmatprep.subr.mxu1 %v836_v0  ;;  %p772_p0 = pnand %p771_p13, %p765_p7 }
  0x56   : > { %640 = vmatprep.mubr.msk.f32.mxu1 %vm837_vm1, %v836_v0 }
 0x112   : > { %v257_v14 = vpop.f32.mrf.mxu0 }
 0x114   : > { %v259_v15 = vpop.f32.mrf.mxu0 }
 0x115   : > { %634 = vmatpush3.xpose.msra.mxu0 %v259_v15  ;;  %v328_v16 = vpop.f32.mrf.mxu1 }
 0x116   : > { %639 = vmatpush3.msra.mxu1 %v328_v16 }
 0x117   : > { %v632_v17 = vpop.f32.mrf.mxu1 }
 0x118   : > { %636 = vmatmul.mubr.f32.vlgmr.msra.gmra.mxu0 %v257_v14 }
 0x1d8   : > { %v398_v21 = vpop.f32.mrf.mxu0 }
 0x1d9   : > { %v407_v22 = vsel %vm406_vm2, -1e+30, %v398_v21 }
 0x1da   : > { %v409_v23 = vsel %vm408_vm3, %v407_v22, -inf  ;;  %v637_v24 = vpop.f32.mrf.mxu0 }
 0x1db   : > { %v410_v25 = vrot.slane %v409_v23, 4 }
 0x1dd   : > { %v411_v26 = vmax.f32 %v409_v23, %v410_v25 }
 0x1df   : > { %v412_v27 = vrot.slane %v411_v26, 2 }
 0x1e1   : > { %v413_v28 = vmax.f32 %v411_v26, %v412_v27 }
 0x1e3   : > { %v414_v29 = vrot.slane %v413_v28, 1 }
 0x1e5   : > { %v415_v30 = vmax.f32 %v413_v28, %v414_v29 }
 0x1e7   : > { %v416_v31 = vsub.f32 %v407_v22, %v415_v30 }
 0x1e9   : > { %v417_v32 = vmul.f32 1.442695, %v416_v31 }
 0x1eb   : > { %704 = vpow2.f32 %v417_v32 }
 0x1f8   : > { %v705_v33 = vpop.eup %704 }
 0x1f9   : > { %v419_v34 = vsel %vm408_vm3, %v705_v33, 0.0 }
 0x1fa   : > { %v420_v35 = vrot.slane %v419_v34, 4 }
 0x1fc   : > { %v421_v36 = vadd.f32 %v420_v35, %v419_v34 }
 0x1fe   : > { %v422_v37 = vrot.slane %v421_v36, 2 }
 0x200   : > { %v423_v38 = vadd.f32 %v422_v37, %v421_v36 }
 0x202   : > { %v424_v39 = vrot.slane %v423_v38, 1 }
 0x204   : > { %v425_v40 = vadd.f32 %v424_v39, %v423_v38 }
 0x206   : > { %706 = vrcp.f32 %v425_v40 }
 0x213   : > { %v707_v41 = vpop.eup %706 }
 0x214   : > { %v427_v42 = vmul.f32 %v707_v41, %v705_v33 }
 0x216   : > { %641 = vmatmul.mubr.msk.f32.vlgmr.msra.gmra.mxu1 %vm408_vm3, %v427_v42 }
 0x2d6   : > { %v497_v43 = vpop.f32.mrf.mxu1 }
 0x2d7   : > { %501 = vst [vmem:[%s173_s15] sm:$0xff] %v497_v43 }
 0x2d8   : > { %v642_v44 = vpop.f32.mrf.mxu1 }
 0x2d9   : > { %775 = shalt.err (!%p772_p0)
}
 0x2da   : > { %s776_s27 = scalar_lea.hbm %s991_s20, 128  ;;  %s780_s4 = scalar_lea.hbm %s1034_s2, 256 }
 0x2db   : > { %p777_p5 = scmp.ne.s32.totalorder %s991_s20, %s776_s27  ;;  %p781_p1 = scmp.lt.s32.totalorder %s991_s20, %s1034_s2 }
 0x2dc   : > { %p782_p4 = scmp.lt.s32.totalorder %s780_s4, %s776_s27 }
 0x2dd   : > { %p778_p9 = pnand %p777_p5, %p1050_p3 }
 0x2de   : > { %p783_p6 = por %p782_p4, %p781_p1 }
 0x2df   : > { %p779_p12 = pneg %p778_p9 }
 0x2e1   : > { %p784_p8 = pnand %p783_p6, %p779_p12 }
 0x2e3   : > { %787 = shalt.err (!%p784_p8)
}
 0x2e4   : > { %649 = dma.vmem_to_hbm [thread:$0]  (%p1050_p3), %s986_s17, 128, %s991_s20, %s503_s23  }
 0x2e5 PF: > { %s528_s7 = sand.u32 1, %s818_s9   ;;  %p1051_p11 = scmp.ne.s32.totalorder %s1040_s16, 0 }
 0x2e6   : > { %p1052_p7 = scmp.ge.s32.totalorder %s830_s12, 2  ;;  %s529_s14 = scalar_lea.sflag [#allocation4], %s528_s7 }
 0x2e8   : > { %p660_p10 = pnand %p1052_p7, %p1051_p11 }
 0x2ea   : > { %p661_p2 = pneg %p660_p10 }
 0x2ec   : > { %813 = dma.done.wait (%p661_p2), %s529_s14, 128  }
 0x2ed   : > { %815 = vsyncadd (%p661_p2), %s529_s14, 4294967168  ;;  %p16_p13 = scmp.ge.s32.totalorder %s908_s21, 4   ;;  %s1053_s9 = smov %s822_s10 }
 0x2ee   : > { %s1054_s10 = smov %s826_s11  ;;  %s1055_s11 = smov %s925_s29 }
 0x2ef   : > { %s1056_s12 = smov %s908_s21  ;;  %18 = sbr.rel (!%p16_p13) target bundleno = 6 (0x6), region = 77 }
 0x2f4   :  { %534 = vsyncpa [#allocation3], 1 }
 0x2f5   :  { %536 = vsyncpa [#allocation3 + $0x1], 1 }
 0x2f6   :  { %537 = vsyncpa [#allocation6], 1 }
 0x2f7   :  { %538 = vsyncpa [#allocation4], 1 }
 0x2f8   :  { %540 = vsyncpa [#allocation4 + $0x1], 1 }

</bundles_post_ra>
